<compile_context>
chip_gen: v7x
topology: tpu7x:2x2x1
jax: 0.10.0
libtpu: 0.0.40
codegen_flags: <defaults>
</compile_context>

<pallas_src>
import numpy as np
import jax
import jax.numpy as jnp
from jax.experimental import pallas as pl
from jax.experimental.pallas import tpu as pltpu


def _critic_kernel(s_ref, a_ref, w1s_ref, w1a_ref, b1_ref,
                   w2_ref, b2_ref, w3_ref, b3_ref, out_ref):
    """One batch-tile of the 3-layer critic MLP."""
    # fc1 with the concat folded in: xs @ W1 == s @ W1[:Ds] + a @ W1[Ds:].
    s = s_ref[...].astype(jnp.bfloat16)
    a = a_ref[...].astype(jnp.bfloat16)
    h1 = (jnp.dot(s, w1s_ref[...], preferred_element_type=jnp.float32)
          + jnp.dot(a, w1a_ref[...], preferred_element_type=jnp.float32)
          + b1_ref[...])
    h1 = jnp.maximum(h1, 0.0)                                     # relu, f32 VPU

    h2 = jnp.dot(h1.astype(jnp.bfloat16), w2_ref[...],
                 preferred_element_type=jnp.float32) + b2_ref[...]
    h2 = jnp.maximum(h2, 0.0)                                     # relu, f32 VPU

    # fc3 has a single output column: VPU multiply + XLU lane reduction instead
    # of pushing a 1-column result through the MXU.
    q = jnp.sum(h2 * w3_ref[...], axis=-1, keepdims=True) + b3_ref[...]
    out_ref[...] = q.astype(out_ref.dtype)                        # (TB, 1)


def low_dim_critic_forward(states, actions, params, batch_tile=None):
    """states: (B, state_dim), actions: (B, action_dim) -> Q-values (B, 1)."""
    w1s, w1a, b1, w2, b2, w3, b3 = params
    B, state_dim = states.shape
    action_dim = actions.shape[1]

    # Batch tile: multiple of 8 sublanes, capped at 512 rows (sized with large
    # headroom against v7x's 64 MiB VMEM). Pad the batch so tiles divide evenly.
    if batch_tile is None:
        batch_tile = min(512, pl.cdiv(B, 8) * 8)
    b_pad = pl.cdiv(B, batch_tile) * batch_tile
    if b_pad != B:
        states = jnp.pad(states, ((0, b_pad - B), (0, 0)))
        actions = jnp.pad(actions, ((0, b_pad - B), (0, 0)))

    # Weights/biases: one full-extent VMEM block, reused for every batch tile.
    full = lambda a: pl.BlockSpec(a.shape, lambda i: (0, 0))
    # Activations/output: tiled along the batch (sublane) axis.
    tile = lambda d: pl.BlockSpec((batch_tile, d), lambda i: (i, 0))

    # NOTE: output stays (B, 1) to match the module; for very large B a
    # lane-dense output slab would avoid masked vst stores (wrapper-side layout).
    out = pl.pallas_call(
        _critic_kernel,
        out_shape=jax.ShapeDtypeStruct((b_pad, 1), jnp.float32),
        grid=(b_pad // batch_tile,),
        in_specs=[tile(state_dim), tile(action_dim),
                  full(w1s), full(w1a), full(b1),
                  full(w2), full(b2), full(w3), full(b3)],
        out_specs=pl.BlockSpec((batch_tile, 1), lambda i: (i, 0)),
        compiler_params=pltpu.CompilerParams(
            dimension_semantics=("parallel",)),
    )(states, actions, w1s, w1a, b1, w2, b2, w3, b3)
    return out[:B] if b_pad != B else out


def init_params(key, state_dim, action_dim, fc1u, fc2u):
    """Deterministic synthetic init mirroring LowDimCritic.reset_parameters.

    hidden_init uses weight.size()[0] (the *output* dim of the PyTorch (out,in)
    weight) for the uniform limit; we replicate that. fc1's weight is generated
    as one (in, out) matrix and split into state/action halves so the kernel
    never materializes cat([states, actions]). Matmul weights are stored bf16
    (native MXU input dtype on v6e/v7x); biases and the fc3 row stay f32.
    """
    k1, k2, k3, k4, k5, k6 = jax.random.split(key, 6)
    lim1 = 1.0 / np.sqrt(fc1u)
    lim2 = 1.0 / np.sqrt(fc2u)
    w1 = jax.random.uniform(k1, (state_dim + action_dim, fc1u), jnp.float32, -lim1, lim1)
    b1 = jax.random.uniform(k4, (1, fc1u), jnp.float32, -lim1, lim1)
    w2 = jax.random.uniform(k2, (fc1u, fc2u), jnp.float32, -lim2, lim2)
    b2 = jax.random.uniform(k5, (1, fc2u), jnp.float32, -lim2, lim2)
    w3 = jax.random.uniform(k3, (1, fc2u), jnp.float32, -0.003, 0.003)  # fc3 weight as a row
    b3 = jax.random.uniform(k6, (1, 1), jnp.float32, -0.003, 0.003)
    w1s = w1[:state_dim].astype(jnp.bfloat16)
    w1a = w1[state_dim:].astype(jnp.bfloat16)
    return (w1s, w1a, b1, w2.astype(jnp.bfloat16), b2, w3, b3)


if __name__ == "__main__":
    batch = 8
    state_dim = 24
    action_dim = 8
    fc1u, fc2u = 64, 32                    # small hidden sizes for the demo

    key = jax.random.PRNGKey(0)
    k_s, k_a, k_p = jax.random.split(key, 3)
    states = jax.random.normal(k_s, (batch, state_dim), jnp.float32)
    actions = jax.random.normal(k_a, (batch, action_dim), jnp.float32)
    params = init_params(k_p, state_dim, action_dim, fc1u, fc2u)

    q = jax.block_until_ready(low_dim_critic_forward(states, actions, params))

    # Pure-JAX reference using the same bf16-in / f32-accumulate matmul recipe.
    w1s, w1a, b1, w2, b2, w3, b3 = params
    h1 = jnp.maximum(
        jnp.dot(states.astype(jnp.bfloat16), w1s, preferred_element_type=jnp.float32)
        + jnp.dot(actions.astype(jnp.bfloat16), w1a, preferred_element_type=jnp.float32)
        + b1, 0.0)
    h2 = jnp.maximum(
        jnp.dot(h1.astype(jnp.bfloat16), w2, preferred_element_type=jnp.float32) + b2, 0.0)
    ref = jnp.sum(h2 * w3, axis=-1, keepdims=True) + b3
    np.testing.assert_allclose(np.asarray(q), np.asarray(ref), rtol=2e-3, atol=2e-3)

    assert q.shape == (batch, 1)
    print("KERNEL_OK")
</pallas_src>

<mosaic_0001>
module attributes {stable_mosaic.version = 11 : i64} {
  func.func @_critic_kernel(%arg0: i32, %arg1: memref<8x24xf32, #tpu.memory_space<vmem>>, %arg2: memref<8x8xf32, #tpu.memory_space<vmem>>, %arg3: memref<24x64xbf16, #tpu.memory_space<vmem>>, %arg4: memref<8x64xbf16, #tpu.memory_space<vmem>>, %arg5: memref<1x64xf32, #tpu.memory_space<vmem>>, %arg6: memref<64x32xbf16, #tpu.memory_space<vmem>>, %arg7: memref<1x32xf32, #tpu.memory_space<vmem>>, %arg8: memref<1x32xf32, #tpu.memory_space<vmem>>, %arg9: memref<1x1xf32, #tpu.memory_space<vmem>>, %arg10: memref<8x1xf32, #tpu.memory_space<vmem>>) attributes {dimension_semantics = [#tpu.dimension_semantics<parallel>], iteration_bounds = array<i64: 1>, scalar_prefetch = 0 : i64, scratch_operands = 0 : i64, tpu.core_type = #tpu.core_type<tc>, window_params = [{transform_indices = @transform_0, window_bounds = array<i64: 8, 24>}, {transform_indices = @transform_1, window_bounds = array<i64: 8, 8>}, {pipeline_mode = #tpu.pipeline_mode<synchronous>, transform_indices = @transform_2, window_bounds = array<i64: 24, 64>}, {pipeline_mode = #tpu.pipeline_mode<synchronous>, transform_indices = @transform_3, window_bounds = array<i64: 8, 64>}, {pipeline_mode = #tpu.pipeline_mode<synchronous>, transform_indices = @transform_4, window_bounds = array<i64: 1, 64>}, {pipeline_mode = #tpu.pipeline_mode<synchronous>, transform_indices = @transform_5, window_bounds = array<i64: 64, 32>}, {pipeline_mode = #tpu.pipeline_mode<synchronous>, transform_indices = @transform_6, window_bounds = array<i64: 1, 32>}, {pipeline_mode = #tpu.pipeline_mode<synchronous>, transform_indices = @transform_7, window_bounds = array<i64: 1, 32>}, {pipeline_mode = #tpu.pipeline_mode<synchronous>, transform_indices = @transform_8, window_bounds = array<i64: 1, 1>}, {transform_indices = @transform_9, window_bounds = array<i64: 8, 1>}]} {
    %c0 = arith.constant 0 : index
    %c0_0 = arith.constant 0 : index
    %0 = vector.load %arg1[%c0, %c0_0] : memref<8x24xf32, #tpu.memory_space<vmem>>, vector<8x24xf32>
    %1 = arith.truncf %0 : vector<8x24xf32> to vector<8x24xbf16>
    %c0_1 = arith.constant 0 : index
    %c0_2 = arith.constant 0 : index
    %2 = vector.load %arg2[%c0_1, %c0_2] : memref<8x8xf32, #tpu.memory_space<vmem>>, vector<8x8xf32>
    %3 = arith.truncf %2 : vector<8x8xf32> to vector<8x8xbf16>
    %c0_3 = arith.constant 0 : index
    %c0_4 = arith.constant 0 : index
    %4 = vector.load %arg3[%c0_3, %c0_4] : memref<24x64xbf16, #tpu.memory_space<vmem>>, vector<24x64xbf16>
    %cst = arith.constant dense<0.000000e+00> : vector<8x64xf32>
    %5 = tpu.matmul %1, %4, %cst {dimension_numbers = #tpu.dot_dimension_numbers<[1], [0], [0], [1], [0, 0, 1, 1], [], []>} : vector<8x24xbf16>, vector<24x64xbf16>, vector<8x64xf32> -> vector<8x64xf32>
    %c0_5 = arith.constant 0 : index
    %c0_6 = arith.constant 0 : index
    %6 = vector.load %arg4[%c0_5, %c0_6] : memref<8x64xbf16, #tpu.memory_space<vmem>>, vector<8x64xbf16>
    %cst_7 = arith.constant dense<0.000000e+00> : vector<8x64xf32>
    %7 = tpu.matmul %3, %6, %cst_7 {dimension_numbers = #tpu.dot_dimension_numbers<[1], [0], [0], [1], [0, 0, 1, 1], [], []>} : vector<8x8xbf16>, vector<8x64xbf16>, vector<8x64xf32> -> vector<8x64xf32>
    %8 = arith.addf %5, %7 : vector<8x64xf32>
    %c0_8 = arith.constant 0 : index
    %c0_9 = arith.constant 0 : index
    %9 = vector.load %arg5[%c0_8, %c0_9] : memref<1x64xf32, #tpu.memory_space<vmem>>, vector<1x64xf32>
    %10 = vector.broadcast %9 : vector<1x64xf32> to vector<8x64xf32>
    %11 = arith.addf %8, %10 : vector<8x64xf32>
    %cst_10 = arith.constant 0.000000e+00 : f32
    %12 = vector.broadcast %cst_10 : f32 to vector<8x64xf32>
    %13 = arith.maximumf %11, %12 : vector<8x64xf32>
    %14 = arith.truncf %13 : vector<8x64xf32> to vector<8x64xbf16>
    %c0_11 = arith.constant 0 : index
    %c0_12 = arith.constant 0 : index
    %15 = vector.load %arg6[%c0_11, %c0_12] : memref<64x32xbf16, #tpu.memory_space<vmem>>, vector<64x32xbf16>
    %cst_13 = arith.constant dense<0.000000e+00> : vector<8x32xf32>
    %16 = tpu.matmul %14, %15, %cst_13 {dimension_numbers = #tpu.dot_dimension_numbers<[1], [0], [0], [1], [0, 0, 1, 1], [], []>} : vector<8x64xbf16>, vector<64x32xbf16>, vector<8x32xf32> -> vector<8x32xf32>
    %c0_14 = arith.constant 0 : index
    %c0_15 = arith.constant 0 : index
    %17 = vector.load %arg7[%c0_14, %c0_15] : memref<1x32xf32, #tpu.memory_space<vmem>>, vector<1x32xf32>
    %18 = vector.broadcast %17 : vector<1x32xf32> to vector<8x32xf32>
    %19 = arith.addf %16, %18 : vector<8x32xf32>
    %cst_16 = arith.constant 0.000000e+00 : f32
    %20 = vector.broadcast %cst_16 : f32 to vector<8x32xf32>
    %21 = arith.maximumf %19, %20 : vector<8x32xf32>
    %c0_17 = arith.constant 0 : index
    %c0_18 = arith.constant 0 : index
    %22 = vector.load %arg8[%c0_17, %c0_18] : memref<1x32xf32, #tpu.memory_space<vmem>>, vector<1x32xf32>
    %23 = vector.broadcast %22 : vector<1x32xf32> to vector<8x32xf32>
    %24 = arith.mulf %21, %23 : vector<8x32xf32>
    %cst_19 = arith.constant dense<0.000000e+00> : vector<8xf32>
    %25 = vector.multi_reduction <add>, %24, %cst_19 [1] : vector<8x32xf32> to vector<8xf32>
    %26 = vector.shape_cast %25 : vector<8xf32> to vector<8x1xf32>
    %c0_20 = arith.constant 0 : index
    %c0_21 = arith.constant 0 : index
    %27 = vector.load %arg9[%c0_20, %c0_21] : memref<1x1xf32, #tpu.memory_space<vmem>>, vector<1x1xf32>
    %28 = vector.broadcast %27 : vector<1x1xf32> to vector<8x1xf32>
    %29 = arith.addf %26, %28 : vector<8x1xf32>
    %c0_22 = arith.constant 0 : index
    %c0_23 = arith.constant 0 : index
    %30 = vector.load %arg10[%c0_22, %c0_23] : memref<8x1xf32, #tpu.memory_space<vmem>>, vector<8x1xf32>
    tpu.vector_store %arg10[%c0_22, %c0_23], %29 {strides = array<i32>} : memref<8x1xf32, #tpu.memory_space<vmem>>, vector<8x1xf32>,
    return
  }
  func.func @transform_0(%arg0: i32) -> (i32, i32) {
    %c0_i32 = arith.constant 0 : i32
    %c0_i32_0 = arith.constant 0 : i32
    return %arg0, %c0_i32 : i32, i32
  }
  func.func @transform_1(%arg0: i32) -> (i32, i32) {
    %c0_i32 = arith.constant 0 : i32
    %c0_i32_0 = arith.constant 0 : i32
    return %arg0, %c0_i32 : i32, i32
  }
  func.func @transform_2(%arg0: i32) -> (i32, i32) {
    %c0_i32 = arith.constant 0 : i32
    %c0_i32_0 = arith.constant 0 : i32
    %c0_i32_1 = arith.constant 0 : i32
    return %c0_i32, %c0_i32_0 : i32, i32
  }
  func.func @transform_3(%arg0: i32) -> (i32, i32) {
    %c0_i32 = arith.constant 0 : i32
    %c0_i32_0 = arith.constant 0 : i32
    %c0_i32_1 = arith.constant 0 : i32
    return %c0_i32, %c0_i32_0 : i32, i32
  }
  func.func @transform_4(%arg0: i32) -> (i32, i32) {
    %c0_i32 = arith.constant 0 : i32
    %c0_i32_0 = arith.constant 0 : i32
    %c0_i32_1 = arith.constant 0 : i32
    return %c0_i32, %c0_i32_0 : i32, i32
  }
  func.func @transform_5(%arg0: i32) -> (i32, i32) {
    %c0_i32 = arith.constant 0 : i32
    %c0_i32_0 = arith.constant 0 : i32
    %c0_i32_1 = arith.constant 0 : i32
    return %c0_i32, %c0_i32_0 : i32, i32
  }
  func.func @transform_6(%arg0: i32) -> (i32, i32) {
    %c0_i32 = arith.constant 0 : i32
    %c0_i32_0 = arith.constant 0 : i32
    %c0_i32_1 = arith.constant 0 : i32
    return %c0_i32, %c0_i32_0 : i32, i32
  }
  func.func @transform_7(%arg0: i32) -> (i32, i32) {
    %c0_i32 = arith.constant 0 : i32
    %c0_i32_0 = arith.constant 0 : i32
    %c0_i32_1 = arith.constant 0 : i32
    return %c0_i32, %c0_i32_0 : i32, i32
  }
  func.func @transform_8(%arg0: i32) -> (i32, i32) {
    %c0_i32 = arith.constant 0 : i32
    %c0_i32_0 = arith.constant 0 : i32
    %c0_i32_1 = arith.constant 0 : i32
    return %c0_i32, %c0_i32_0 : i32, i32
  }
  func.func @transform_9(%arg0: i32) -> (i32, i32) {
    %c0_i32 = arith.constant 0 : i32
    %c0_i32_0 = arith.constant 0 : i32
    return %arg0, %c0_i32 : i32, i32
  }
}

</mosaic_0001>

<bundles_post_ra>
// kernel: tpu_custom_call.1
= control target key start
LH: loop header
LB: loop body
LE: loop exit
PB: predicated region body
PF: predicated region fallthrough
CT: control target
= control target key end

     0   :  { %vm47_vm0 = vcmask 1043456   ;;  %v324_v0 = vmov 0.0   ;;  %vm325_vm1 = vmmov 0   ;;  %vm43_vm2 = vcmask 64512   ;;  %s420_s2 = inlined_call_operand.vmem [shape: bf16[24,64], index: 2, kind: input, shape index: {}]   ;;  %s421_s3 = inlined_call_operand.vmem [shape: bf16[8,64], index: 3, kind: input, shape index: {}]   ;;  %s422_s1 = inlined_call_operand.vmem [shape: f32[8,8], index: 1, kind: input, shape index: {}]   ;;  %s423_s0 = inlined_call_operand.vmem [shape: f32[8,24], index: 0, kind: input, shape index: {}]   ;;  %s424_s5 = inlined_call_operand.vmem [shape: bf16[64,32], index: 5, kind: input, shape index: {}]   ;;  %s425_s4 = inlined_call_operand.vmem [shape: f32[1,64], index: 4, kind: input, shape index: {}]   ;;  %s426_s8 = inlined_call_operand.<no memory space> [shape: f32[1,1], index: 8, kind: input, shape index: {}]   ;;  %s427_s6 = inlined_call_operand.vmem [shape: f32[1,32], index: 6, kind: input, shape index: {}]   ;;  %s428_s7 = inlined_call_operand.vmem [shape: f32[1,32], index: 7, kind: input, shape index: {}]   ;;  %s429_s9 = inlined_call_operand.vmem [shape: f32[8,1], index: 9, kind: output, shape index: {}]  }
   0x1   :  { %290 = vmatprep.subr.bf16.mxu1 %v324_v0  ;;  %v42_v1 = vld [vmem:[%s421_s3] sm:$0xf]  ;;  %292 = vmatprep.mubr.msk.bf16.mxu1 %vm325_vm1, %v324_v0  ;;  %v318_v6 = vld [vmem:[%s420_s2 + $0x8] ss:$0 sps:$4 sm:$0xff]   ;;  %vm100_vm3 = vcmask 195584   ;;  %v322_v12 = vld [vmem:[%s424_s5 + $0x10] sm:$0xff]   ;;  %v14_v27 = vstv %s426_s8 }
   0x2   :  { %v49_v2 = vsel %vm47_vm0, %v42_v1, 0  ;;  %v37_v3 = vld [vmem:[%s422_s1] sm:$0xff]  ;;  %304 = vmatprep.subr.bf16.mxu0 %v324_v0  ;;  %312 = vmatprep.mubr.msk.bf16.mxu0 %vm325_vm1, %v324_v0  ;;  %v105_v8 = vsel %vm47_vm0, %v318_v6, 0  ;;  %v321_v11 = vld [vmem:[%s424_s5 + $0x8] sm:$0xff]   ;;  %v323_v13 = vld [vmem:[%s424_s5 + $0x18] sm:$0xff]   ;;  %vm196_vm4 = vcmask 523264  }
   0x3   :  { %291 = vmatpush3.bf16.msra.mxu1 %v49_v2  ;;  %v38_v4 = vpack.c.bf16 %v37_v3, %v37_v3  ;;  %v319_v5 = vld [vmem:[%s420_s2] sm:$0xff]   ;;  %15 = vst [vmem:[#allocation2] sm:$0x1] %v14_v27  ;;  %vm249_vm5 = vcmask 261120   ;;  %vm261_vm6 = vcmask 7168  }
   0x4   :  { %296 = vmatprep.subr.bf16.mxu1 %v324_v0  ;;  %v35_v7 = vld [vmem:[%s423_s0] sm:$0xff] }
   0x5   :  { %v36_v9 = vpack.c.bf16 %v35_v7, %v35_v7  ;;  %v320_v10 = vld [vmem:[%s424_s5] sm:$0xff]  }
   0x6   :  { %293 = vmatmul.mubr.msk.bf16.vlgmr.msra.gmra.mrb[0].mxu1 %vm43_vm2, %v38_v4  ;;  %305 = vmatpush3.bf16.msra.mxu0 %v320_v10  ;;  %v271_v19 = vld [vmem:[%s425_s4] ss:$0 sm:$0xff] }
   0x7   :  { %297 = vmatpush3.bf16.msra.mxu1 %v319_v5  ;;  %300 = vmatprep.mubr.msk.bf16.mxu1 %vm325_vm1, %v324_v0  ;;  %v272_v28 = vld [vmem:[%s427_s6] ss:$0 sm:$0xff] }
   0x8   :  { %298 = vmatprep.subr.bf16.mxu1 %v324_v0  ;;  %306 = vmatprep.subr.bf16.mxu0 %v324_v0  ;;  %v278_v33 = vld [vmem:[%s428_s7] ss:$0 sm:$0xff] }
   0xa   :  { %307 = vmatpush3.bf16.msra.mxu0 %v321_v11  ;;  %v279_v38 = vld [vmem:[#allocation2] ss:$0 sm:$0xff] }
   0xb   :  { %299 = vmatpush3.bf16.msra.mxu1 %v105_v8  ;;  %308 = vmatprep.subr.bf16.mxu0 %v324_v0 }
   0xe   :  { %301 = vmatmul.mubr.msk.bf16.vlgmr.msra.gmra.mrb[4].mxu1 %vm100_vm3, %v36_v9  ;;  %309 = vmatpush3.bf16.msra.mxu0 %v322_v12 }
   0xf   :  { %310 = vmatprep.subr.bf16.mxu0 %v324_v0 }
  0x12   :  { %311 = vmatpush3.bf16.msra.mxu0 %v323_v13 }
  0xd9   :  { %v85_v14 = vpop.f32.mrb[0].mxu1 }
  0xda   :  { %v294_v15 = vpop.f32.mrb[1].mxu1 }
  0xdb   :  { %v88_v16 = vpop.f32.mrb[2].mxu1 }
  0xdc   :  { %v295_v17 = vpop.f32.mrb[3].mxu1 }
  0xe1   :  { %v141_v18 = vpop.f32.mrb[4].mxu1 }
  0xe2   :  { %v142_v20 = vadd.f32 %v141_v18, %v85_v14  ;;  %v302_v21 = vpop.f32.mrb[5].mxu1 }
  0xe3   :  { %v144_v22 = vpop.f32.mrb[6].mxu1 }
  0xe4   :  { %v154_v23 = vadd.f32 %v271_v19, %v142_v20  ;;  %v303_v24 = vpop.f32.mrb[7].mxu1 }
  0xe6   :  { %v155_v25 = vmax.f32 %v154_v23, 0.0 }
  0xe8   :  { %v156_v26 = vpack.c.bf16 %v155_v25, %v155_v25 }
  0xea   :  { %313 = vmatmul.mubr.msk.bf16.vlgmr.msra.gmra.mrb[0].mxu0 %vm196_vm4, %v156_v26 }
 0x1bd   :  { %v234_v29 = vpop.f32.mrb[0].mxu0 }
 0x1be   :  { %v235_v30 = vadd.f32 %v272_v28, %v234_v29  ;;  %v314_v31 = vpop.f32.mrb[1].mxu0 }
 0x1bf   :  { %v237_v32 = vpop.f32.mrb[2].mxu0 }
 0x1c0   :  { %v240_v34 = vmax.f32 %v235_v30, 0.0  ;;  %v315_v35 = vpop.f32.mrb[3].mxu0 }
 0x1c2   :  { %v248_v36 = vmul.f32 %v278_v33, %v240_v34 }
 0x1c4   :  { %v250_v37 = vsel %vm249_vm5, %v248_v36, 0.0 }
 0x1c5   :  { %251 = vadd.xlane.f32.xlu0 %v250_v37 }
 0x252   :  { %v252_v39 = vpop.xlane.xlu0 %251 }
 0x253   :  { %v260_v40 = vadd.f32 %v279_v38, %v252_v39 }
 0x255   :  { %262 = vst.msk [vmem:[%s429_s9] sm:$0xff] %vm261_vm6, %v260_v40 }

</bundles_post_ra>
